<compile_context>
chip_gen: v7x
topology: tpu7x:2x2x1
jax: 0.10.0
libtpu: 0.0.40
codegen_flags: <defaults>
</compile_context>

<pallas_src>
import numpy as np
import jax
import jax.numpy as jnp
from jax import lax
from jax.experimental import pallas as pl
from jax.experimental.pallas import tpu as pltpu


def _round_up(x, m):
    return (x + m - 1) // m * m


# ----------------------------- Pallas kernel -------------------------------

def _criterion_kernel(zp_ref, vp_ref, gt_ref, mask_ref, niv_ref, out_ref):
    # zp_ref  : [2, K, TILE_N]  pred x / pred y planes
    # vp_ref  : [K, TILE_N]     pred keypoint-visibility probabilities (raw)
    # gt_ref  : [3, K, TILE_N]  gt x / gt y / gt visibility (0 on unmatched cols)
    # mask_ref: [1, TILE_N]     matched-instance mask (float 0/1)
    # niv_ref : [K, 1]          -1 / (2 * (2*sigma)^2)
    # out_ref : [1, 8, 128]     per-tile partial sums at [0, 0, 0:4]
    xp = zp_ref[0]
    yp = zp_ref[1]
    vp = vp_ref[...]
    xg = gt_ref[0]
    yg = gt_ref[1]
    vg = gt_ref[2]
    m = mask_ref[...]            # [1, TILE_N]
    niv = niv_ref[...]           # [K, 1]

    dx = xp - xg
    dy = yp - yg

    # ---- OKS loss (OKSLoss, linear=True, area=1, eps=1e-6) ----
    d2 = dx * dx + dy * dy
    e = jnp.exp(d2 * niv)                                 # divide folded into niv
    num = jnp.sum(e * vg, axis=0, keepdims=True)          # sublane reduce -> [1, T]
    den = jnp.sum(vg, axis=0, keepdims=True) + 1e-6
    oks = jnp.maximum(num / den, 1e-6)
    oks_loss = (1.0 - oks) * m                            # linear=True

    # ---- L1 keypoint loss, weighted by GT visibility ----
    l1 = (jnp.abs(dx) + jnp.abs(dy)) * vg

    # ---- visibility BCE (targets are exactly 0/1 -> single log) ----
    # clamp at -100 BEFORE masking so vp==1 on unmatched columns can't give inf*0.
    p_sel = jnp.where(vg > 0.0, vp, 1.0 - vp)
    bce = -jnp.maximum(jnp.log(p_sel), -100.0) * m

    # single unmasked (8,128) store; partial sums land at lanes 0..3.
    lane = lax.broadcasted_iota(jnp.int32, (8, 128), 1)
    out_ref[0] = jnp.where(lane == 0, jnp.sum(l1),
                 jnp.where(lane == 1, jnp.sum(oks_loss),
                 jnp.where(lane == 2, jnp.sum(m),
                 jnp.where(lane == 3, jnp.sum(bce), 0.0))))


# --------------------------- SetCriterion wrapper ---------------------------

# COCO sigmas used by OKSLoss(num_keypoints=17)
_COCO_SIGMAS = np.array(
    [.26, .25, .25, .35, .35, .79, .79, .72, .72,
     .62, .62, 1.07, 1.07, .87, .87, .89, .89], dtype=np.float32) / 10.0


class SetCriterionPallas:
    """JAX/Pallas port of SetCriterion.forward (keypoint losses only)."""

    def __init__(self, weight_dict, num_body_points=17, max_tile_n=8192):
        assert num_body_points == 17, "OKS sigmas defined for 17 keypoints"
        assert max_tile_n % 128 == 0
        self.weight_dict = weight_dict
        self.K = num_body_points
        self.max_tile_n = max_tile_n
        var = (2.0 * _COCO_SIGMAS) ** 2                    # (2*sigma)^2
        self.neg_inv_two_var = jnp.asarray(
            (-1.0 / (2.0 * var)).astype(np.float32).reshape(self.K, 1))

    def __call__(self, outputs, targets):
        K = self.K
        pred = outputs["pred_keypoints"]                    # [B, Q, 3K]
        padding_mask = np.asarray(outputs["padding_mask"])  # [B, Q] bool, True=padded
        B, Q, _ = pred.shape
        N = B * Q

        # num_boxes = clamp(sum_i len(targets[i]['keypoints']), min=1)
        # TODO(synk): distributed all_reduce(num_boxes) / get_world_size not ported.
        total_targets = sum(int(np.asarray(t["keypoints"]).shape[0]) for t in targets)
        num_boxes = float(max(total_targets, 1))

        # ---- tiling along N (lane axis) -------------------------------------
        n128 = _round_up(N, 128)
        tile_n = min(self.max_tile_n, n128)
        # when the problem is big, keep >=2 grid steps so the "parallel" axis
        # can shard across v7x's two TensorCores (no-op cost on 1-TC chips).
        if n128 > 4096 and n128 // tile_n < 2:
            tile_n = _round_up((n128 + 1) // 2, 128)
        n_pad = _round_up(n128, tile_n)
        num_tiles = n_pad // tile_n

        # ---- host-side numpy: GT planes + matched mask, built directly in the
        #      padded [., K, N_pad] layout (zero device-side prep passes). -----
        # (i-th valid query slot of image b pairs with i-th GT, as implied by the
        #  reference's pred[valid_indices] <-> targets concatenation.)
        gt = np.zeros((3, K, n_pad), np.float32)            # xg, yg, vg planes
        m_np = np.zeros((1, n_pad), np.float32)
        for b, t in enumerate(targets):
            kp = np.asarray(t["keypoints"], np.float32)
            valid_idx = np.where(~padding_mask[b])[0]
            n = min(valid_idx.shape[0], kp.shape[0])
            if n == 0:
                continue
            cols = b * Q + valid_idx[:n]
            z = kp[:n, :2 * K].reshape(n, K, 2)
            gt[0][:, cols] = z[:, :, 0].T
            gt[1][:, cols] = z[:, :, 1].T
            gt[2][:, cols] = kp[:n, 2 * K:].T
            m_np[0, cols] = 1.0
        gt = jnp.asarray(gt)
        mask = jnp.asarray(m_np)

        # ---- device-side prep: ONE fused relayout of the predictions --------
        pf = pred.reshape(N, 3 * K).astype(jnp.float32)
        zp = jnp.transpose(pf[:, :2 * K].reshape(N, K, 2), (2, 1, 0))   # [2, K, N]
        vp = jnp.transpose(pf[:, 2 * K:], (1, 0))                       # [K, N]
        zp = jnp.pad(zp, ((0, 0), (0, 0), (0, n_pad - N)))
        vp = jnp.pad(vp, ((0, 0), (0, n_pad - N)))

        partials = pl.pallas_call(
            _criterion_kernel,
            out_shape=jax.ShapeDtypeStruct((num_tiles, 8, 128), jnp.float32),
            grid=(num_tiles,),
            in_specs=[
                pl.BlockSpec((2, K, tile_n), lambda i: (0, 0, i)),
                pl.BlockSpec((K, tile_n), lambda i: (0, i)),
                pl.BlockSpec((3, K, tile_n), lambda i: (0, 0, i)),
                pl.BlockSpec((1, tile_n), lambda i: (0, i)),
                pl.BlockSpec((K, 1), lambda i: (0, 0)),
            ],
            out_specs=pl.BlockSpec((1, 8, 128), lambda i: (i, 0, 0)),
            compiler_params=pltpu.CompilerParams(
                dimension_semantics=("parallel",),
                vmem_limit_bytes=32 * 1024 * 1024),
        )(zp, vp, gt, mask, self.neg_inv_two_var)

        sums = jnp.sum(partials[:, 0, :4], axis=0)           # [l1, oks, cnt, bce]
        l1_sum, oks_sum, cnt, bce_sum = sums[0], sums[1], sums[2], sums[3]

        # OKSLoss(reduction='mean') -> mean over matched instances, then the
        # criterion does .sum() / num_boxes on that scalar.
        oks_mean = oks_sum / jnp.maximum(cnt, 1.0)
        return {
            "loss_keypoints": l1_sum / num_boxes,
            "loss_oks": oks_mean / num_boxes,
            "loss_visibility": bce_sum / num_boxes,
        }


# ------------------------------ reference (jnp) -----------------------------

def _reference(outputs, targets, K):
    sig = jnp.asarray(_COCO_SIGMAS)
    var = (sig * 2.0) ** 2
    pred = outputs["pred_keypoints"]
    pm = outputs["padding_mask"]
    preds, gts = [], []
    for i, t in enumerate(targets):
        idx = np.where(~np.asarray(pm[i]))[0]
        if len(idx) == 0 or t["keypoints"].shape[0] == 0:
            continue
        preds.append(pred[i][idx])
        gts.append(t["keypoints"])
    p = jnp.concatenate(preds, 0)
    g = jnp.concatenate(gts, 0)
    num_boxes = float(max(sum(int(t["keypoints"].shape[0]) for t in targets), 1))
    Zp, Zg = p[:, :2 * K], g[:, :2 * K]
    Vg, Vp = g[:, 2 * K:], p[:, 2 * K:]
    zp = Zp.reshape(-1, K, 2)
    zg = Zg.reshape(-1, K, 2)
    d2 = jnp.sum((zp - zg) ** 2, -1)
    e = jnp.exp(-d2 / (var[None, :] * 2.0)) * Vg
    oks = jnp.maximum(e.sum(1) / (Vg.sum(1) + 1e-6), 1e-6)
    oks_mean = jnp.mean(1.0 - oks)
    l1 = jnp.abs(Zp - Zg) * jnp.repeat(Vg, 2, axis=1)
    tgt = (Vg > 0).astype(jnp.float32)
    bce = -(tgt * jnp.log(Vp) + (1 - tgt) * jnp.log(1 - Vp))
    return {
        "loss_keypoints": l1.sum() / num_boxes,
        "loss_oks": oks_mean / num_boxes,
        "loss_visibility": bce.sum() / num_boxes,
    }


# ---------------------------------- main ------------------------------------

if __name__ == "__main__":
    K = 17       # num_body_points
    B, Q = 2, 8  # small shapes

    key = jax.random.PRNGKey(0)
    k1, k2, k3, k4, k5 = jax.random.split(key, 5)

    # predictions: coords in [0,1], visibilities via sigmoid -> (0,1)
    pred_xy = jax.random.uniform(k1, (B, Q, 2 * K), dtype=jnp.float32)
    pred_v = jax.nn.sigmoid(jax.random.normal(k2, (B, Q, K), dtype=jnp.float32))
    pred_keypoints = jnp.concatenate([pred_xy, pred_v], axis=-1)   # [B, Q, 3K]

    # padding mask: first n_i queries of each image are valid (True = padded)
    n_valid = [5, 3]
    padding_mask = jnp.array(
        [[q >= n_valid[b] for q in range(Q)] for b in range(B)], dtype=bool)

    # targets: one GT instance per valid query, interleaved (x,y)*K + vis*K
    targets = []
    tk = jax.random.split(k3, B)
    for b in range(B):
        n = n_valid[b]
        ka, kb = jax.random.split(tk[b])
        txy = jax.random.uniform(ka, (n, 2 * K), dtype=jnp.float32)
        tv = (jax.random.uniform(kb, (n, K)) > 0.3).astype(jnp.float32)
        tv = tv.at[:, 0].set(1.0)   # ensure >=1 visible keypoint per instance
        targets.append({"keypoints": jnp.concatenate([txy, tv], axis=-1)})

    outputs = {"pred_keypoints": pred_keypoints, "padding_mask": padding_mask}

    criterion = SetCriterionPallas(weight_dict={"loss_keypoints": 1.0,
                                                "loss_oks": 1.0,
                                                "loss_visibility": 1.0},
                                   num_body_points=K)
    losses = criterion(outputs, targets)
    jax.block_until_ready(losses)

    ref = _reference(outputs, targets, K)
    for name in losses:
        np.testing.assert_allclose(np.asarray(losses[name]),
                                   np.asarray(ref[name]),
                                   rtol=1e-5, atol=1e-6)

    print("KERNEL_OK")
</pallas_src>

<mosaic_0001>
module attributes {stable_mosaic.version = 11 : i64} {
  func.func @_criterion_kernel(%arg0: i32, %arg1: memref<2x17x128xf32, #tpu.memory_space<vmem>>, %arg2: memref<17x128xf32, #tpu.memory_space<vmem>>, %arg3: memref<3x17x128xf32, #tpu.memory_space<vmem>>, %arg4: memref<1x128xf32, #tpu.memory_space<vmem>>, %arg5: memref<17x1xf32, #tpu.memory_space<vmem>>, %arg6: memref<1x8x128xf32, #tpu.memory_space<vmem>>) attributes {dimension_semantics = [#tpu.dimension_semantics<parallel>], iteration_bounds = array<i64: 1>, scalar_prefetch = 0 : i64, scratch_operands = 0 : i64, tpu.core_type = #tpu.core_type<tc>, window_params = [{transform_indices = @transform_0, window_bounds = array<i64: 2, 17, 128>}, {transform_indices = @transform_1, window_bounds = array<i64: 17, 128>}, {transform_indices = @transform_2, window_bounds = array<i64: 3, 17, 128>}, {transform_indices = @transform_3, window_bounds = array<i64: 1, 128>}, {pipeline_mode = #tpu.pipeline_mode<synchronous>, transform_indices = @transform_4, window_bounds = array<i64: 17, 1>}, {transform_indices = @transform_5, window_bounds = array<i64: 1, 8, 128>}]} {
    %c0 = arith.constant 0 : index
    %c0_0 = arith.constant 0 : index
    %c0_1 = arith.constant 0 : index
    %0 = vector.load %arg1[%c0, %c0_0, %c0_1] : memref<2x17x128xf32, #tpu.memory_space<vmem>>, vector<1x17x128xf32>
    %1 = vector.shape_cast %0 : vector<1x17x128xf32> to vector<17x128xf32>
    %c1 = arith.constant 1 : index
    %c0_2 = arith.constant 0 : index
    %c0_3 = arith.constant 0 : index
    %2 = vector.load %arg1[%c1, %c0_2, %c0_3] : memref<2x17x128xf32, #tpu.memory_space<vmem>>, vector<1x17x128xf32>
    %3 = vector.shape_cast %2 : vector<1x17x128xf32> to vector<17x128xf32>
    %c0_4 = arith.constant 0 : index
    %c0_5 = arith.constant 0 : index
    %4 = vector.load %arg2[%c0_4, %c0_5] : memref<17x128xf32, #tpu.memory_space<vmem>>, vector<17x128xf32>
    %c0_6 = arith.constant 0 : index
    %c0_7 = arith.constant 0 : index
    %c0_8 = arith.constant 0 : index
    %5 = vector.load %arg3[%c0_6, %c0_7, %c0_8] : memref<3x17x128xf32, #tpu.memory_space<vmem>>, vector<1x17x128xf32>
    %6 = vector.shape_cast %5 : vector<1x17x128xf32> to vector<17x128xf32>
    %c1_9 = arith.constant 1 : index
    %c0_10 = arith.constant 0 : index
    %c0_11 = arith.constant 0 : index
    %7 = vector.load %arg3[%c1_9, %c0_10, %c0_11] : memref<3x17x128xf32, #tpu.memory_space<vmem>>, vector<1x17x128xf32>
    %8 = vector.shape_cast %7 : vector<1x17x128xf32> to vector<17x128xf32>
    %c2 = arith.constant 2 : index
    %c0_12 = arith.constant 0 : index
    %c0_13 = arith.constant 0 : index
    %9 = vector.load %arg3[%c2, %c0_12, %c0_13] : memref<3x17x128xf32, #tpu.memory_space<vmem>>, vector<1x17x128xf32>
    %10 = vector.shape_cast %9 : vector<1x17x128xf32> to vector<17x128xf32>
    %c0_14 = arith.constant 0 : index
    %c0_15 = arith.constant 0 : index
    %11 = vector.load %arg4[%c0_14, %c0_15] : memref<1x128xf32, #tpu.memory_space<vmem>>, vector<1x128xf32>
    %c0_16 = arith.constant 0 : index
    %c0_17 = arith.constant 0 : index
    %12 = vector.load %arg5[%c0_16, %c0_17] : memref<17x1xf32, #tpu.memory_space<vmem>>, vector<17x1xf32>
    %13 = arith.subf %1, %6 : vector<17x128xf32>
    %14 = arith.subf %3, %8 : vector<17x128xf32>
    %15 = arith.mulf %13, %13 : vector<17x128xf32>
    %16 = arith.mulf %14, %14 : vector<17x128xf32>
    %17 = arith.addf %15, %16 : vector<17x128xf32>
    %18 = vector.broadcast %12 : vector<17x1xf32> to vector<17x128xf32>
    %19 = arith.mulf %17, %18 : vector<17x128xf32>
    %20 = math.exp %19 : vector<17x128xf32>
    %21 = arith.mulf %20, %10 : vector<17x128xf32>
    %cst = arith.constant dense<0.000000e+00> : vector<128xf32>
    %22 = vector.multi_reduction <add>, %21, %cst [0] : vector<17x128xf32> to vector<128xf32>
    %23 = vector.shape_cast %22 : vector<128xf32> to vector<1x128xf32>
    %cst_18 = arith.constant dense<0.000000e+00> : vector<128xf32>
    %24 = vector.multi_reduction <add>, %10, %cst_18 [0] : vector<17x128xf32> to vector<128xf32>
    %25 = vector.shape_cast %24 : vector<128xf32> to vector<1x128xf32>
    %cst_19 = arith.constant 9.99999997E-7 : f32
    %26 = vector.broadcast %cst_19 : f32 to vector<1x128xf32>
    %27 = arith.addf %25, %26 : vector<1x128xf32>
    %28 = arith.divf %23, %27 : vector<1x128xf32>
    %cst_20 = arith.constant 9.99999997E-7 : f32
    %29 = vector.broadcast %cst_20 : f32 to vector<1x128xf32>
    %30 = arith.maximumf %28, %29 : vector<1x128xf32>
    %cst_21 = arith.constant 1.000000e+00 : f32
    %31 = vector.broadcast %cst_21 : f32 to vector<1x128xf32>
    %32 = arith.subf %31, %30 : vector<1x128xf32>
    %33 = arith.mulf %32, %11 : vector<1x128xf32>
    %34 = math.absf %13 : vector<17x128xf32>
    %35 = math.absf %14 : vector<17x128xf32>
    %36 = arith.addf %34, %35 : vector<17x128xf32>
    %37 = arith.mulf %36, %10 : vector<17x128xf32>
    %cst_22 = arith.constant 0.000000e+00 : f32
    %38 = vector.broadcast %cst_22 : f32 to vector<17x128xf32>
    %39 = arith.cmpf ogt, %10, %38 : vector<17x128xf32>
    %cst_23 = arith.constant 1.000000e+00 : f32
    %40 = vector.broadcast %cst_23 : f32 to vector<17x128xf32>
    %41 = arith.subf %40, %4 : vector<17x128xf32>
    %42 = arith.select %39, %4, %41 : vector<17x128xi1>, vector<17x128xf32>
    %43 = math.log %42 : vector<17x128xf32>
    %cst_24 = arith.constant -1.000000e+02 : f32
    %44 = vector.broadcast %cst_24 : f32 to vector<17x128xf32>
    %45 = arith.maximumf %43, %44 : vector<17x128xf32>
    %cst_25 = arith.constant 0.000000e+00 : f32
    %46 = vector.broadcast %cst_25 : f32 to vector<17x128xf32>
    %47 = arith.subf %46, %45 : vector<17x128xf32>
    %48 = vector.broadcast %11 : vector<1x128xf32> to vector<17x128xf32>
    %49 = arith.mulf %47, %48 : vector<17x128xf32>
    %50 = tpu.iota {dimensions = array<i32: 1>} : vector<8x128xi32>
    %c0_i32 = arith.constant 0 : i32
    %51 = vector.broadcast %c0_i32 : i32 to vector<8x128xi32>
    %52 = arith.cmpi eq, %50, %51 : vector<8x128xi32>
    %53 = vector.shape_cast %37 : vector<17x128xf32> to vector<1x17x128xf32>
    %cst_26 = arith.constant dense<0.000000e+00> : vector<1xf32>
    %54 = vector.multi_reduction <add>, %53, %cst_26 [1, 2] : vector<1x17x128xf32> to vector<1xf32>
    %55 = vector.shape_cast %54 : vector<1xf32> to vector<1x1x1xf32>
    %56 = vector.extract %55[0, 0, 0] : f32 from vector<1x1x1xf32>
    %c1_i32 = arith.constant 1 : i32
    %57 = vector.broadcast %c1_i32 : i32 to vector<8x128xi32>
    %58 = arith.cmpi eq, %50, %57 : vector<8x128xi32>
    %59 = vector.shape_cast %33 : vector<1x128xf32> to vector<1x1x128xf32>
    %cst_27 = arith.constant dense<0.000000e+00> : vector<1xf32>
    %60 = vector.multi_reduction <add>, %59, %cst_27 [1, 2] : vector<1x1x128xf32> to vector<1xf32>
    %61 = vector.shape_cast %60 : vector<1xf32> to vector<1x1x1xf32>
    %62 = vector.extract %61[0, 0, 0] : f32 from vector<1x1x1xf32>
    %c2_i32 = arith.constant 2 : i32
    %63 = vector.broadcast %c2_i32 : i32 to vector<8x128xi32>
    %64 = arith.cmpi eq, %50, %63 : vector<8x128xi32>
    %65 = vector.shape_cast %11 : vector<1x128xf32> to vector<1x1x128xf32>
    %cst_28 = arith.constant dense<0.000000e+00> : vector<1xf32>
    %66 = vector.multi_reduction <add>, %65, %cst_28 [1, 2] : vector<1x1x128xf32> to vector<1xf32>
    %67 = vector.shape_cast %66 : vector<1xf32> to vector<1x1x1xf32>
    %68 = vector.extract %67[0, 0, 0] : f32 from vector<1x1x1xf32>
    %c3_i32 = arith.constant 3 : i32
    %69 = vector.broadcast %c3_i32 : i32 to vector<8x128xi32>
    %70 = arith.cmpi eq, %50, %69 : vector<8x128xi32>
    %71 = vector.shape_cast %49 : vector<17x128xf32> to vector<1x17x128xf32>
    %cst_29 = arith.constant dense<0.000000e+00> : vector<1xf32>
    %72 = vector.multi_reduction <add>, %71, %cst_29 [1, 2] : vector<1x17x128xf32> to vector<1xf32>
    %73 = vector.shape_cast %72 : vector<1xf32> to vector<1x1x1xf32>
    %74 = vector.extract %73[0, 0, 0] : f32 from vector<1x1x1xf32>
    %cst_30 = arith.constant 0.000000e+00 : f32
    %75 = vector.broadcast %74 : f32 to vector<8x128xf32>
    %76 = vector.broadcast %cst_30 : f32 to vector<8x128xf32>
    %77 = arith.select %70, %75, %76 : vector<8x128xi1>, vector<8x128xf32>
    %78 = vector.broadcast %68 : f32 to vector<8x128xf32>
    %79 = arith.select %64, %78, %77 : vector<8x128xi1>, vector<8x128xf32>
    %80 = vector.broadcast %62 : f32 to vector<8x128xf32>
    %81 = arith.select %58, %80, %79 : vector<8x128xi1>, vector<8x128xf32>
    %82 = vector.broadcast %56 : f32 to vector<8x128xf32>
    %83 = arith.select %52, %82, %81 : vector<8x128xi1>, vector<8x128xf32>
    %c0_31 = arith.constant 0 : index
    %c0_32 = arith.constant 0 : index
    %c0_33 = arith.constant 0 : index
    %84 = vector.load %arg6[%c0_31, %c0_32, %c0_33] : memref<1x8x128xf32, #tpu.memory_space<vmem>>, vector<1x8x128xf32>
    %85 = vector.shape_cast %84 : vector<1x8x128xf32> to vector<8x128xf32>
    %86 = vector.shape_cast %83 : vector<8x128xf32> to vector<1x8x128xf32>
    tpu.vector_store %arg6[%c0_31, %c0_32, %c0_33], %86 {strides = array<i32>} : memref<1x8x128xf32, #tpu.memory_space<vmem>>, vector<1x8x128xf32>,
    return
  }
  func.func @transform_0(%arg0: i32) -> (i32, i32, i32) {
    %c0_i32 = arith.constant 0 : i32
    %c0_i32_0 = arith.constant 0 : i32
    %c0_i32_1 = arith.constant 0 : i32
    return %c0_i32, %c0_i32_0, %arg0 : i32, i32, i32
  }
  func.func @transform_1(%arg0: i32) -> (i32, i32) {
    %c0_i32 = arith.constant 0 : i32
    %c0_i32_0 = arith.constant 0 : i32
    return %c0_i32, %arg0 : i32, i32
  }
  func.func @transform_2(%arg0: i32) -> (i32, i32, i32) {
    %c0_i32 = arith.constant 0 : i32
    %c0_i32_0 = arith.constant 0 : i32
    %c0_i32_1 = arith.constant 0 : i32
    return %c0_i32, %c0_i32_0, %arg0 : i32, i32, i32
  }
  func.func @transform_3(%arg0: i32) -> (i32, i32) {
    %c0_i32 = arith.constant 0 : i32
    %c0_i32_0 = arith.constant 0 : i32
    return %c0_i32, %arg0 : i32, i32
  }
  func.func @transform_4(%arg0: i32) -> (i32, i32) {
    %c0_i32 = arith.constant 0 : i32
    %c0_i32_0 = arith.constant 0 : i32
    %c0_i32_1 = arith.constant 0 : i32
    return %c0_i32, %c0_i32_0 : i32, i32
  }
  func.func @transform_5(%arg0: i32) -> (i32, i32, i32) {
    %c0_i32 = arith.constant 0 : i32
    %c0_i32_0 = arith.constant 0 : i32
    %c0_i32_1 = arith.constant 0 : i32
    return %arg0, %c0_i32, %c0_i32_0 : i32, i32, i32
  }
}

</mosaic_0001>

<bundles_post_ra>
// kernel: tpu_custom_call.1
= control target key start
LH: loop header
LB: loop body
LE: loop exit
PB: predicated region body
PF: predicated region fallthrough
CT: control target
= control target key end

     0   :  { %v287_v2 = vmov 0   ;;  %s437_s0 = inlined_call_operand.vmem [shape: f32[2,17,128], index: 0, kind: input, shape index: {}]   ;;  %s438_s1 = inlined_call_operand.vmem [shape: f32[17,128], index: 1, kind: input, shape index: {}]   ;;  %s439_s2 = inlined_call_operand.vmem [shape: f32[3,17,128], index: 2, kind: input, shape index: {}]   ;;  %s440_s3 = inlined_call_operand.vmem [shape: f32[1,128], index: 3, kind: input, shape index: {}]   ;;  %s441_s4 = inlined_call_operand.vmem [shape: f32[17,1], index: 4, kind: input, shape index: {}]   ;;  %s442_s5 = inlined_call_operand.hbm [shape: f32[1,8,128], index: 5, kind: output, shape index: {}]  }
   0x1   :  { %v43_v0 = vld [vmem:[%s441_s4] sm:$0xff]  ;;  %v45_v1 = vld [vmem:[%s441_s4 + $0x10] sm:$0x1]  ;;  %247 = vset.pattern.permute.xlu0 %v287_v2  ;;  %248 = vset.pattern.permute.xlu1 %v287_v2  ;;  %v44_v3 = vld [vmem:[%s441_s4 + $0x8] sm:$0xff] }
   0x2   :  { %v21_v4 = vld [vmem:[%s437_s0] sm:$0xff]  ;;  %v228_v5 = vld [vmem:[%s437_s0 + $0x18] sm:$0xff]  ;;  %63 = vperm.xlu0 %247, %v43_v0   ;;  %73 = vperm.xlu1 %248, %v45_v1   ;;  %v22_v9 = vld [vmem:[%s437_s0 + $0x8] sm:$0xff] }
   0x3   :  { %v31_v6 = vld [vmem:[%s439_s2] sm:$0xff]  ;;  %v231_v7 = vld [vmem:[%s439_s2 + $0x18] sm:$0xff]  ;;  %v32_v12 = vld [vmem:[%s439_s2 + $0x8] sm:$0xff] }
   0x4   :  { %v46_v8 = vsub.f32 %v21_v4, %v31_v6  ;;  %v229_v10 = vld [vmem:[%s437_s0 + $0x20] sm:$0xff]  ;;  %v49_v11 = vsub.f32 %v228_v5, %v231_v7  ;;  %v23_v14 = vld [vmem:[%s437_s0 + $0x10] sm:$0x1]  ;;  %v47_v16 = vsub.f32 %v22_v9, %v32_v12  ;;  %v230_v18 = vld [vmem:[%s437_s0 + $0x28] sm:$0x1] }
   0x5   :  { %v232_v13 = vld [vmem:[%s439_s2 + $0x20] sm:$0xff]  ;;  %v33_v19 = vld [vmem:[%s439_s2 + $0x10] sm:$0x1]  ;;  %v233_v20 = vld [vmem:[%s439_s2 + $0x28] sm:$0x1] }
   0x6   :  { %v52_v15 = vmul.f32 %v46_v8, %v46_v8  ;;  %v50_v17 = vsub.f32 %v229_v10, %v232_v13  ;;  %v55_v21 = vmul.f32 %v49_v11, %v49_v11  ;;  %v48_v22 = vsub.f32 %v23_v14, %v33_v19 }
   0x7   :  { %v51_v23 = vsub.f32 %v230_v18, %v233_v20 }
   0x8   :  { %10 = vsyncpa [#allocation3], 0  ;;  %68 = vperm.xlu0 %247, %v44_v3   ;;  %v53_v24 = vmul.f32 %v47_v16, %v47_v16  ;;  %v56_v25 = vmul.f32 %v50_v17, %v50_v17  ;;  %v364_v26 = vadd.f32 %v55_v21, %v52_v15  ;;  %v54_v27 = vmul.f32 %v48_v22, %v48_v22  ;;  %v28_v35 = vld [vmem:[%s438_s1] sm:$0xff]  ;;  %v29_v36 = vld [vmem:[%s438_s1 + $0x8] sm:$0xff]  ;;  %s288_s10 = smov [#allocation2]  }
   0x9   :  { %v57_v28 = vmul.f32 %v51_v23, %v51_v23  ;;  %v113_v31 = vand.u32 2147483647, %v46_v8  ;;  %v116_v32 = vand.u32 2147483647, %v49_v11  ;;  %v114_v33 = vand.u32 2147483647, %v47_v16 }
   0xa   :  { %v366_v29 = vadd.f32 %v56_v25, %v53_v24  ;;  %v117_v34 = vand.u32 2147483647, %v50_v17  ;;  %v379_v37 = vld [vmem:[%s439_s2 + $0x30] sm:$0xff]  ;;  %v384_v38 = vld [vmem:[%s439_s2 + $0x38] sm:$0xff]  ;;  %v128_v40 = vsub.f32 1.0, %v28_v35  ;;  %v129_v41 = vsub.f32 1.0, %v29_v36 }
   0xb   :  { %v368_v30 = vadd.f32 %v57_v28, %v54_v27  ;;  %v30_v39 = vld [vmem:[%s438_s1 + $0x10] sm:$0x1]  ;;  %v392_v42 = vld [vmem:[%s439_s2 + $0x40] sm:$0x1]  ;;  %v115_v43 = vand.u32 2147483647, %v48_v22  ;;  %v119_v45 = vadd.f32 %v116_v32, %v113_v31  ;;  %v147_v52 = vlaneseq }
   0xc   :  { %v118_v44 = vand.u32 2147483647, %v51_v23  ;;  %v120_v46 = vadd.f32 %v117_v34, %v114_v33  ;;  %vm125_vm0 = vcmp.gt.f32.partialorder %v379_v37, 0.0  ;;  %vm126_vm1 = vcmp.gt.f32.partialorder %v384_v38, 0.0  ;;  %v405_v62 = vld [vmem:[%s440_s3] sm:$0x1] }
   0xd   :  { %vm127_vm2 = vcmp.gt.f32.partialorder %v392_v42, 0.0  ;;  %v130_v48 = vsub.f32 1.0, %v30_v39  ;;  %v131_v49 = vsel %vm125_vm0, %v28_v35, %v128_v40  ;;  %v132_v50 = vsel %vm126_vm1, %v29_v36, %v129_v41  ;;  %s220_s11 = sshll.u32 %s288_s10, 4  ;;  %s221_s11 = int_to_ptr.vmem [resolvable:$true] %s220_s11 }
   0xe   :  { %v121_v47 = vadd.f32 %v118_v44, %v115_v43  ;;  %249 = vlog2.f32 %v131_v49  ;;  %v122_v53 = vmul.f32 %v379_v37, %v119_v45  ;;  %v123_v54 = vmul.f32 %v384_v38, %v120_v46  ;;  %s263_s12 = scalar_lea.vmem %s221_s11, 128  ;;  %p268_p1 = scmp.lt.s32.totalorder %s221_s11, %s221_s11 }
   0xf   :  { %v133_v51 = vsel %vm127_vm2, %v30_v39, %v130_v48  ;;  %251 = vlog2.f32 %v132_v50  ;;  %v148_v56 = vshrl.u32 %v147_v52, 7  ;;  %vm89_vm3 = vcmask 1040384   ;;  %p264_p0 = scmp.ne.s32.totalorder %s221_s11, %s263_s12  ;;  %p269_p2 = scmp.lt.s32.totalorder %s263_s12, %s263_s12 }
  0x10   :  { %253 = vlog2.f32 %v133_v51  ;;  %v124_v55 = vmul.f32 %v392_v42, %v121_v47  ;;  %v158_v57 = vadd.f32 %v123_v54, %v122_v53  ;;  %v98_v17 = vadd.f32 %v384_v38, %v379_v37 }
  0x11   :  { %v149_v59 = vsub.s32 0, %v148_v56  ;;  %v99_v18 = vsel %vm89_vm3, %v392_v42, 0.0  ;;  %p270_p3 = por %p269_p2, %p268_p1 }
  0x12   :  { %v159_v58 = vsel %vm89_vm3, %v124_v55, 0.0  ;;  %v100_v19 = vadd.f32 %v99_v18, %v98_v17 }
  0x13   :  { %v160_v61 = vadd.f32 %v159_v58, %v158_v57  ;;  %v150_v5 = vrot.slane %v405_v62, %v149_v59  ;;  %v182_v58 = vsel %vm89_vm3, %v405_v62, 0.0  ;;  %p271_p4 = pnand %p270_p3, %p264_p0 }
  0x14   :  { %v101_v20 = vrot.slane %v100_v19, 4 }
  0x16   :  { %v102_v25 = vadd.f32 %v101_v20, %v100_v19 }
  0x18   :  { %v250_v60 = vpop.eup %249  ;;  %v103_v33 = vrot.slane %v102_v25, 2 }
  0x19   :  { %v252_v63 = vpop.eup %251  ;;  %v135_v0 = vmul.f32 0.6931472, %v250_v60 }
  0x1a   :  { %v254_v1 = vpop.eup %253  ;;  %v137_v2 = vmul.f32 0.6931472, %v252_v63  ;;  %v104_v35 = vadd.f32 %v103_v33, %v102_v25 }
  0x1b   :  { %v139_v3 = vmul.f32 0.6931472, %v254_v1  ;;  %v140_v4 = vmax.f32 %v135_v0, -100.0 }
  0x1c   :  { %v141_v6 = vmax.f32 %v137_v2, -100.0  ;;  %v105_v36 = vrot.slane %v104_v35, 1 }
  0x1d   :  { %v142_v7 = vmax.f32 %v139_v3, -100.0  ;;  %v143_v8 = vsub.f32 0.0, %v140_v4 }
  0x1e   :  { %v144_v9 = vsub.f32 0.0, %v141_v6 }
  0x1f   :  { %v145_v10 = vsub.f32 0.0, %v142_v7  ;;  %v152_v11 = vmul.f32 %v150_v5, %v143_v8 }
  0x20   :  { %v153_v12 = vmul.f32 %v150_v5, %v144_v9 }
  0x21   :  { %v154_v13 = vmul.f32 %v150_v5, %v145_v10 }
  0x22   :  { %v193_v14 = vadd.f32 %v153_v12, %v152_v11 }
  0x23   :  { %v194_v15 = vsel %vm89_vm3, %v154_v13, 0.0 }
  0x24   :  { %v195_v16 = vadd.f32 %v194_v15, %v193_v14 }
  0x26   :  { %161 = vadd.xlane.f32.xlu1 %v160_v61 }
  0x2a   :  { %196 = vadd.xlane.f32.xlu1 %v195_v16 }
  0x81   :  { %v64_v21 = vpop.permute.xlu0 %63  ;;  %v74_v22 = vpop.permute.xlu1 %73 }
  0x82   :  { %v76_v23 = vmul.f32 %v64_v21, %v364_v26  ;;  %v78_v24 = vmul.f32 %v74_v22, %v368_v30  ;;  %v106_v26 = vadd.f32 %v105_v36, %v104_v35 }
  0x84   :  { %v79_v27 = vmul.f32 1.442695, %v76_v23  ;;  %v83_v28 = vmul.f32 1.442695, %v78_v24  ;;  %v156_v23 = vand.u32 127, %v147_v52 }
  0x86   :  { %255 = vpow2.f32 %v83_v28  ;;  %vm192_vm4 = vcmp.eq.s32.totalorder %v156_v23, 3  ;;  %vm181_vm5 = vcmp.eq.s32.totalorder %v156_v23, 2  ;;  %vm170_vm6 = vcmp.eq.s32.totalorder %v156_v23, 1 }
  0x87   :  { %v69_v31 = vpop.permute.xlu0 %68  ;;  %257 = vpow2.f32 %v79_v27  ;;  %vm157_vm7 = vcmp.eq.s32.totalorder %v156_v23, 0 }
  0x88   :  { %v77_v32 = vmul.f32 %v69_v31, %v366_v29  ;;  %v107_v29 = vadd.f32 1e-06, %v106_v26 }
  0x8a   :  { %v81_v34 = vmul.f32 1.442695, %v77_v32 }
  0x8c   :  { %259 = vpow2.f32 %v81_v34 }
  0x8d   :  { %261 = vrcp.f32 %v107_v29 }
  0x90   :  { %v256_v39 = vpop.eup %255 }
  0x91   :  { %v258_v40 = vpop.eup %257  ;;  %v87_v41 = vmul.f32 %v256_v39, %v392_v42 }
  0x92   :  { %v85_v44 = vmul.f32 %v258_v40, %v379_v37 }
  0x93   :  { %v90_v45 = vsel %vm89_vm3, %v87_v41, 0.0 }
  0x96   :  { %v260_v43 = vpop.eup %259 }
  0x97   :  { %v86_v30 = vmul.f32 %v260_v43, %v384_v38  ;;  %v262_v54 = vpop.eup %261 }
  0x99   :  { %v88_v46 = vadd.f32 %v86_v30, %v85_v44 }
  0x9b   :  { %v91_v47 = vadd.f32 %v90_v45, %v88_v46 }
  0x9d   :  { %v92_v48 = vrot.slane %v91_v47, 4 }
  0x9f   :  { %v93_v49 = vadd.f32 %v92_v48, %v91_v47 }
  0xa1   :  { %v94_v50 = vrot.slane %v93_v49, 2 }
  0xa3   :  { %v95_v51 = vadd.f32 %v94_v50, %v93_v49 }
  0xa5   :  { %v96_v53 = vrot.slane %v95_v51, 1 }
  0xa7   :  { %v97_v55 = vadd.f32 %v96_v53, %v95_v51 }
  0xa9   :  { %v109_v42 = vmul.f32 %v262_v54, %v97_v55 }
  0xab   :  { %v110_v56 = vmax.f32 %v109_v42, 1e-06 }
  0xad   :  { %v111_v57 = vsub.f32 1.0, %v110_v56 }
  0xaf   :  { %v112_v38 = vmul.f32 %v111_v57, %v405_v62 }
  0xb1   :  { %v171_v37 = vsel %vm89_vm3, %v112_v38, 0.0 }
  0xb2   :  { %172 = vadd.xlane.f32.xlu0 %v171_v37 }
  0xb3   :  { %v162_v59 = vpop.xlane.xlu1 %161 }
  0xb4   :  { %v163_v60 = vrot.slane %v162_v59, 4 }
  0xb6   :  { %183 = vadd.xlane.f32.xlu0 %v182_v58  ;;  %v164_v61 = vadd.f32 %v163_v60, %v162_v59 }
  0xb7   :  { %v197_v3 = vpop.xlane.xlu1 %196 }
  0xb8   :  { %v165_v63 = vrot.slane %v164_v61, 2  ;;  %v198_v4 = vrot.slane %v197_v3, 4 }
  0xba   :  { %v166_v0 = vadd.f32 %v165_v63, %v164_v61  ;;  %v199_v5 = vadd.f32 %v198_v4, %v197_v3 }
  0xbc   :  { %v167_v1 = vrot.slane %v166_v0, 1  ;;  %v200_v9 = vrot.slane %v199_v5, 2 }
  0xbe   :  { %v168_v2 = vadd.f32 %v167_v1, %v166_v0  ;;  %v201_v14 = vadd.f32 %v200_v9, %v199_v5 }
  0xc0   :  { %237 = vpush %v168_v2  ;;  %v202_v19 = vrot.slane %v201_v14, 1 }
  0xc2   :  { %v203_v22 = vadd.f32 %v202_v19, %v201_v14 }
  0xf1   :  { %s238_s3 = spop %237 }
  0xf2   :  { %v211_v32 = vstv %s238_s3 }
 0x13f   :  { %v173_v6 = vpop.xlane.xlu0 %172 }
 0x140   :  { %v174_v7 = vrot.slane %v173_v6, 4 }
 0x142   :  { %v175_v8 = vadd.f32 %v174_v7, %v173_v6 }
 0x143   :  { %v184_v10 = vpop.xlane.xlu0 %183 }
 0x144   :  { %v176_v11 = vrot.slane %v175_v8, 2  ;;  %v185_v12 = vrot.slane %v184_v10, 4 }
 0x146   :  { %v186_v62 = vadd.f32 %v185_v12, %v184_v10  ;;  %v177_v13 = vadd.f32 %v176_v11, %v175_v8 }
 0x148   :  { %v187_v15 = vrot.slane %v186_v62, 2  ;;  %v178_v16 = vrot.slane %v177_v13, 1 }
 0x14a   :  { %v188_v17 = vadd.f32 %v187_v15, %v186_v62  ;;  %v179_v18 = vadd.f32 %v178_v16, %v177_v13 }
 0x14c   :  { %239 = vpush %v179_v18  ;;  %v189_v20 = vrot.slane %v188_v17, 1 }
 0x14e   :  { %v190_v21 = vadd.f32 %v189_v20, %v188_v17 }
 0x150   :  { %241 = vpush %v190_v21 }
 0x151   :  { %243 = vpush %v203_v22 }
 0x17d   :  { %s240_s7 = spop %239 }
 0x17e   :  { %v209_v28 = vstv %s240_s7 }
 0x181   :  { %s242_s8 = spop %241 }
 0x182   :  { %v207_v24 = vstv %s242_s8  ;;  %s244_s9 = spop %243 }
 0x183   :  { %v205_v25 = vstv %s244_s9 }
 0x184   :  { %v206_v27 = vsel %vm192_vm4, %v205_v25, 0.0 }
 0x185   :  { %v208_v31 = vsel %vm181_vm5, %v207_v24, %v206_v27 }
 0x186   :  { %v210_v33 = vsel %vm170_vm6, %v209_v28, %v208_v31 }
 0x187   :  { %v212_v34 = vsel %vm157_vm7, %v211_v32, %v210_v33 }
 0x188   :  { %213 = vst [vmem:[#allocation2] sm:$0xff] %v212_v34 }
 0x189   :  { %274 = shalt.err (!%p271_p4)
}
 0x18a   :  { %s275_s15 = scalar_lea.hbm %s442_s5, 128 }
 0x18b   :  { %p276_p5 = scmp.ne.s32.totalorder %s442_s5, %s275_s15  ;;  %p279_p6 = scmp.lt.u32.totalorder %s275_s15, %s442_s5 }
 0x18d   :  { %p281_p7 = pnand %p279_p6, %p276_p5 }
 0x18f   :  { %284 = shalt.err (!%p281_p7)
}
 0x190   :  { %223 = dma.vmem_to_hbm [thread:$0]  %s221_s11, 128, %s442_s5, [#allocation3]  }
 0x191   :  { %285 = dma.done.wait [#allocation3], 128  }
 0x192   :  { %286 = vsyncadd [#allocation3], 4294967168 }
 0x193   :  { %227 = vsyncpa [#allocation3], 1 }

</bundles_post_ra>
